<compile_context>
chip_gen: v5e
topology: v5e:2x2
jax: 0.10.0
libtpu: 0.0.40
codegen_flags: <defaults>
</compile_context>

<pallas_src>
import functools

import jax
import jax.numpy as jnp
from jax.experimental import pallas as pl
from jax.experimental.pallas import tpu as pltpu

LANE = 128  # lane width of the flattened image slabs


def _softplus(x):
    # numerically stable softplus
    return jnp.maximum(x, 0.0) + jnp.log(1.0 + jnp.exp(-jnp.abs(x)))


def elbo_kernel(xt_ref, xo_ref, api_ref, aal_ref,
                mu_ref, logvar_ref, eps_ref, zal2_ref,
                w1a_ref, w1b_ref, b1_ref, w2r_ref, b2_ref,
                out_ref, acc_rec_ref, acc_aux_ref, mi_scr,
                *, batch, n_rows_valid):
    f32 = jnp.float32
    c = pl.program_id(0)          # split (TensorCore) index -- "parallel"
    j = pl.program_id(1)          # tile index within the split -- "arbitrary"
    tpc = pl.num_programs(1)
    tile_rows = xt_ref.shape[0]

    @pl.when(j == 0)
    def _init():
        acc_rec_ref[...] = jnp.zeros_like(acc_rec_ref)
        acc_aux_ref[...] = jnp.zeros_like(acc_aux_ref)
        mi_scr[0] = 0.0
        mi_scr[1] = 0.0
        mi_scr[2] = 0.0
        mi_scr[3] = 0.0

    # KL + MI discriminator: independent of the streamed sums, so run it once at the
    # first step of split 0 where it hides under the image-streaming DMA instead of
    # extending the epilogue after the last wait.
    @pl.when((c == 0) & (j == 0))
    def _kl_mi():
        mu = mu_ref[...].astype(f32)
        logvar = logvar_ref[...].astype(f32)
        # KL of diagonal Gaussian p_pi vs N(0, I)  (p_pi.kl())
        kl_sum = jnp.sum(0.5 * (mu * mu + jnp.exp(logvar) - 1.0 - logvar))

        # p_pi.sample() with externally supplied deterministic noise
        z_pi = mu + jnp.exp(0.5 * logvar) * eps_ref[...].astype(f32)

        # joint + marginal scores fused into two small MXU passes
        zal2 = zal2_ref[...].astype(f32)                  # (2B, Z): [z_al ; flip(z_al)]
        h_pi = jnp.dot(z_pi, w1a_ref[...].astype(f32), preferred_element_type=f32)
        h_al = jnp.dot(zal2, w1b_ref[...].astype(f32), preferred_element_type=f32)
        b1 = b1_ref[...].astype(f32)
        h_j = h_pi + h_al[:batch] + b1
        h_m = h_pi + h_al[batch:] + b1
        h_j = jnp.where(h_j > 0, h_j, 0.2 * h_j)          # LeakyReLU(0.2)
        h_m = jnp.where(h_m > 0, h_m, 0.2 * h_m)

        # width-1 output "matmul" as VPU multiply + lane reduce
        w2r = w2r_ref[...].astype(f32)                    # (1, HID)
        b2 = b2_ref[...].astype(f32)                      # (1, 1)
        l_joint = jnp.sum(h_j * w2r, axis=-1, keepdims=True) + b2   # (B, 1)
        l_marg = jnp.sum(h_m * w2r, axis=-1, keepdims=True) + b2    # (B, 1)

        inv_batch = 1.0 / batch
        mi_scr[0] = kl_sum
        mi_scr[1] = jnp.sum(l_joint) * inv_batch
        mi_scr[2] = 0.5 * inv_batch * jnp.sum(_softplus(-l_joint) + _softplus(l_marg))
        mi_scr[3] = 0.5 * inv_batch * (jnp.sum((l_joint > 0).astype(f32))
                                       + jnp.sum((l_marg < 0).astype(f32)))

    # ---- streamed rec/aux partial sums (VPU-only; per-element accumulators) ----
    start_row = (c * tpc + j) * tile_rows
    row_ids = jax.lax.broadcasted_iota(jnp.int32, (tile_rows, LANE), 0)
    valid = (row_ids + start_row) < n_rows_valid          # masks ragged / clamped tiles

    xt = xt_ref[...].astype(f32)
    d_rec = xt - xo_ref[...].astype(f32)
    d_pi = xt - api_ref[...].astype(f32)
    d_al = xt - aal_ref[...].astype(f32)
    acc_rec_ref[...] += jnp.where(valid, d_rec * d_rec, 0.0)
    acc_aux_ref[...] += jnp.where(valid, 0.5 * (d_pi * d_pi + d_al * d_al), 0.0)

    @pl.when(j == tpc - 1)
    def _finalize():
        out_ref[0, 0] = jnp.sum(acc_rec_ref[...])         # rec partial sum
        out_ref[0, 1] = jnp.sum(acc_aux_ref[...])         # aux partial sum
        out_ref[0, 2] = mi_scr[0]                         # kl sum      (split 0 only)
        out_ref[0, 3] = mi_scr[1]                         # mi          (split 0 only)
        out_ref[0, 4] = mi_scr[2]                         # mi_loss     (split 0 only)
        out_ref[0, 5] = mi_scr[3]                         # mi_acc      (split 0 only)
        out_ref[0, 6] = 0.0
        out_ref[0, 7] = 0.0


def _as_slab(a):
    """Lane-dense (rows, 128) slab in the array's native dtype; zero-copy reshape
    whenever the element count is a multiple of 128 (the common image case)."""
    flat = a.reshape(-1)
    n = flat.shape[0]
    rows = -(-n // LANE)
    if n % LANE == 0 and rows >= 8:
        return flat.reshape(rows, LANE)                   # free bitcast, no HBM copy
    # TODO(synk): only non-lane-aligned totals take this (copying) tiny-pad fallback.
    rows_p = max(8, rows)
    return jnp.pad(flat, (0, rows_p * LANE - n)).reshape(rows_p, LANE)


@functools.partial(jax.jit, static_argnames=("kl_weight", "max_tile_rows"))
def elbo_forward(x_target, x_out, auxpi_out, auxal_out,
                 mu, logvar, eps, z_al, params,
                 kl_weight=1.0, max_tile_rows=2048):
    f32 = jnp.float32
    B = x_target.shape[0]
    n_elems = x_target.size
    n_rows_valid = -(-n_elems // LANE)                    # rows holding real data

    # images stay in their native dtype (bf16-friendly); cast per-tile in kernel
    xt, xo, api, aal = (_as_slab(a) for a in (x_target, x_out, auxpi_out, auxal_out))
    rows_arr = xt.shape[0]

    # single stacked array replaces a separate flipped z_al input
    zal2 = jnp.concatenate([z_al, z_al[::-1]], axis=0)    # (2B, Z)
    w1a = params["w1a"]
    w1b = params["w1b"]
    b1 = params["b1"].reshape(1, -1)
    w2r = params["w2"].reshape(1, -1)                     # (1, HID) row
    b2 = params["b2"].reshape(1, 1)
    Z = mu.shape[1]
    HID = w1a.shape[1]

    # ---- tile sizing from the per-generation VMEM budget -----------------------
    img_itemsize = jnp.dtype(x_target.dtype).itemsize
    try:
        info = pltpu.get_tpu_info()
        vmem_cap = int(getattr(info, "vmem_capacity_bytes", 64 << 20) or (64 << 20))
    except Exception:
        vmem_cap = 64 << 20                               # conservative (v7x per-core)
    vmem_cap = max(vmem_cap, 48 << 20)

    def _gran(r, c):                                      # f32 (8,128)-granule bytes
        return (-(-r // 8) * 8) * (-(-c // LANE) * LANE) * 4

    const_bytes = 2 * (3 * _gran(B, Z) + _gran(2 * B, Z) + 2 * _gran(Z, HID)
                       + 2 * _gran(1, HID) + _gran(1, 1))

    # 4 inputs x 2 pipeline buffers + 2 f32 accumulators, per row of 128 lanes
    per_row = 4 * 2 * LANE * img_itemsize + 2 * LANE * 4
    tile_budget = max(vmem_cap - (16 << 20) - const_bytes, per_row * 8)
    rows_vmem_cap = max(8, (tile_budget // per_row) // 8 * 8)
    rows_arr_cap = max(8, (rows_arr // 8) * 8)            # keep block <= array rows
    tile_rows = max(8, min(int(max_tile_rows) // 8 * 8, rows_arr_cap, rows_vmem_cap))

    n_tiles = -(-rows_arr // tile_rows)
    n_split = 2 if n_tiles >= 2 else 1                    # feed both TCs on v7x
    tpc = -(-n_tiles // n_split)                          # tiles per split

    need = tile_rows * per_row + const_bytes + (8 << 20)
    vmem_limit = int(min(max(need, 32 << 20), vmem_cap - (4 << 20)))

    if n_split * tpc == n_tiles:
        img_index = lambda c, j: (c * tpc + j, 0)
    else:  # clamp the single overhanging grid point; its rows are fully masked
        img_index = lambda c, j: (jnp.minimum(c * tpc + j, n_tiles - 1), 0)

    img_spec = pl.BlockSpec((tile_rows, LANE), img_index)
    const2d = lambda shape: pl.BlockSpec(shape, lambda c, j: (0, 0))  # resident

    kernel = functools.partial(elbo_kernel, batch=B, n_rows_valid=n_rows_valid)

    out = pl.pallas_call(
        kernel,
        grid=(n_split, tpc),
        out_shape=jax.ShapeDtypeStruct((n_split, 8), f32),
        in_specs=[img_spec, img_spec, img_spec, img_spec,
                  const2d((B, Z)), const2d((B, Z)), const2d((B, Z)),
                  const2d((2 * B, Z)),
                  const2d((Z, HID)), const2d((Z, HID)),
                  const2d((1, HID)), const2d((1, HID)), const2d((1, 1))],
        out_specs=pl.BlockSpec((1, 8), lambda c, j: (c, 0),
                               memory_space=pltpu.MemorySpace.SMEM),
        scratch_shapes=[pltpu.VMEM((tile_rows, LANE), f32),
                        pltpu.VMEM((tile_rows, LANE), f32),
                        pltpu.SMEM((8,), f32)],
        compiler_params=pltpu.CompilerParams(
            dimension_semantics=("parallel", "arbitrary"),
            vmem_limit_bytes=vmem_limit),
    )(xt, xo, api, aal, mu, logvar, eps, zal2, w1a, w1b, b1, w2r, b2)

    sums = jnp.sum(out, axis=0)                           # combine per-split partials
    inv_b = 1.0 / B
    rec_loss = sums[0] * inv_b
    aux_loss = sums[1] * inv_b
    kl_loss = sums[2] * inv_b
    mi, mi_loss, mi_acc = sums[3], sums[4], sums[5]
    loss = rec_loss + kl_weight * kl_loss + aux_loss
    return {"loss": loss, "rec_loss": rec_loss, "aux_loss": aux_loss,
            "kl_loss": kl_loss, "mi": mi, "mi_loss": mi_loss, "mi_acc": mi_acc}


def _reference(x_target, x_out, auxpi_out, auxal_out,
               mu, logvar, eps, z_al, params, kl_weight=1.0):
    B = x_target.shape[0]
    f = lambda a: a.reshape(B, -1).astype(jnp.float32)
    xt, xo, api, aal = map(f, (x_target, x_out, auxpi_out, auxal_out))
    rec = jnp.sum((xt - xo) ** 2) / B
    aux = jnp.sum(0.5 * ((xt - api) ** 2 + (xt - aal) ** 2)) / B
    kl = jnp.sum(0.5 * (mu * mu + jnp.exp(logvar) - 1.0 - logvar)) / B
    z_pi = mu + jnp.exp(0.5 * logvar) * eps

    def score(a, b):
        h = a @ params["w1a"] + b @ params["w1b"] + params["b1"]
        h = jnp.where(h > 0, h, 0.2 * h)
        return h @ params["w2"] + params["b2"]

    lj = score(z_pi, z_al)
    lm = score(z_pi, z_al[::-1])
    sp = lambda x: jnp.maximum(x, 0.0) + jnp.log(1.0 + jnp.exp(-jnp.abs(x)))
    return {
        "loss": rec + kl_weight * kl + aux, "rec_loss": rec, "aux_loss": aux,
        "kl_loss": kl, "mi": jnp.mean(lj),
        "mi_loss": 0.5 * jnp.mean(sp(-lj) + sp(lm)),
        "mi_acc": 0.5 * (jnp.mean((lj > 0).astype(jnp.float32))
                         + jnp.mean((lm < 0).astype(jnp.float32))),
    }


if __name__ == "__main__":
    Z, HID = 32, 64

    def make_case(img_shape):
        key = jax.random.PRNGKey(0)
        keys = jax.random.split(key, 11)
        B = img_shape[0]
        x_target = jax.random.normal(keys[0], img_shape, jnp.float32)
        x_out = jax.random.normal(keys[1], img_shape, jnp.float32)
        auxpi_out = jax.random.normal(keys[2], img_shape, jnp.float32)
        auxal_out = jax.random.normal(keys[3], img_shape, jnp.float32)
        mu = 0.1 * jax.random.normal(keys[4], (B, Z), jnp.float32)
        logvar = 0.1 * jax.random.normal(keys[5], (B, Z), jnp.float32)
        eps = jax.random.normal(keys[6], (B, Z), jnp.float32)   # p_pi.sample() noise
        z_al = jax.random.normal(keys[7], (B, Z), jnp.float32)
        params = {
            "w1a": 0.1 * jax.random.normal(keys[8], (Z, HID), jnp.float32),
            "w1b": 0.1 * jax.random.normal(keys[9], (Z, HID), jnp.float32),
            "b1": jnp.zeros((1, HID), jnp.float32),
            "w2": 0.1 * jax.random.normal(keys[10], (HID, 1), jnp.float32),
            "b2": jnp.zeros((1, 1), jnp.float32),
        }
        return (x_target, x_out, auxpi_out, auxal_out, mu, logvar, eps, z_al, params)

    # (image shape, max_tile_rows):
    #   default big tile (single split) / 2 tiles -> one per split row /
    #   odd tile count (clamped overflow + ragged-row mask) / non-lane-aligned fallback.
    cases = [((2, 4, 16, 16), 2048),
             ((2, 4, 16, 16), 8),
             ((2, 5, 16, 16), 8),
             ((2, 3, 5, 7), 2048)]

    for img_shape, mt in cases:
        args = make_case(img_shape)
        out = elbo_forward(*args, kl_weight=1.0, max_tile_rows=mt)
        out = jax.tree_util.tree_map(jax.block_until_ready, out)
        ref = _reference(*args, kl_weight=1.0)
        for k in ref:
            assert jnp.allclose(out[k], ref[k], rtol=2e-3, atol=2e-3), (
                img_shape, mt, k, float(out[k]), float(ref[k]))

    print("KERNEL_OK")
</pallas_src>

<mosaic_0001>
module attributes {stable_mosaic.version = 11 : i64} {
  func.func @elbo_kernel(%arg0: i32, %arg1: i32, %arg2: memref<16x128xf32, #tpu.memory_space<vmem>>, %arg3: memref<16x128xf32, #tpu.memory_space<vmem>>, %arg4: memref<16x128xf32, #tpu.memory_space<vmem>>, %arg5: memref<16x128xf32, #tpu.memory_space<vmem>>, %arg6: memref<2x32xf32, #tpu.memory_space<vmem>>, %arg7: memref<2x32xf32, #tpu.memory_space<vmem>>, %arg8: memref<2x32xf32, #tpu.memory_space<vmem>>, %arg9: memref<4x32xf32, #tpu.memory_space<vmem>>, %arg10: memref<32x64xf32, #tpu.memory_space<vmem>>, %arg11: memref<32x64xf32, #tpu.memory_space<vmem>>, %arg12: memref<1x64xf32, #tpu.memory_space<vmem>>, %arg13: memref<1x64xf32, #tpu.memory_space<vmem>>, %arg14: memref<1x1xf32, #tpu.memory_space<vmem>>, %arg15: memref<1x8xf32, #tpu.memory_space<smem>>, %arg16: memref<16x128xf32, #tpu.memory_space<vmem>>, %arg17: memref<16x128xf32, #tpu.memory_space<vmem>>, %arg18: memref<8xf32, #tpu.memory_space<smem>>) attributes {dimension_semantics = [#tpu.dimension_semantics<parallel>, #tpu.dimension_semantics<arbitrary>], iteration_bounds = array<i64: 1, 1>, scalar_prefetch = 0 : i64, scratch_operands = 3 : i64, tpu.core_type = #tpu.core_type<tc>, window_params = [{transform_indices = @transform_0, window_bounds = array<i64: 16, 128>}, {transform_indices = @transform_1, window_bounds = array<i64: 16, 128>}, {transform_indices = @transform_2, window_bounds = array<i64: 16, 128>}, {transform_indices = @transform_3, window_bounds = array<i64: 16, 128>}, {pipeline_mode = #tpu.pipeline_mode<synchronous>, transform_indices = @transform_4, window_bounds = array<i64: 2, 32>}, {pipeline_mode = #tpu.pipeline_mode<synchronous>, transform_indices = @transform_5, window_bounds = array<i64: 2, 32>}, {pipeline_mode = #tpu.pipeline_mode<synchronous>, transform_indices = @transform_6, window_bounds = array<i64: 2, 32>}, {pipeline_mode = #tpu.pipeline_mode<synchronous>, transform_indices = @transform_7, window_bounds = array<i64: 4, 32>}, {pipeline_mode = #tpu.pipeline_mode<synchronous>, transform_indices = @transform_8, window_bounds = array<i64: 32, 64>}, {pipeline_mode = #tpu.pipeline_mode<synchronous>, transform_indices = @transform_9, window_bounds = array<i64: 32, 64>}, {pipeline_mode = #tpu.pipeline_mode<synchronous>, transform_indices = @transform_10, window_bounds = array<i64: 1, 64>}, {pipeline_mode = #tpu.pipeline_mode<synchronous>, transform_indices = @transform_11, window_bounds = array<i64: 1, 64>}, {pipeline_mode = #tpu.pipeline_mode<synchronous>, transform_indices = @transform_12, window_bounds = array<i64: 1, 1>}, {transform_indices = @transform_13, window_bounds = array<i64: 1, 8>}]} {
    %c0_i32 = arith.constant 0 : i32
    %0 = arith.cmpi eq, %arg1, %c0_i32 : i32
    %1 = arith.extui %0 : i1 to i32
    %c0_i32_0 = arith.constant 0 : i32
    %2 = arith.cmpi ne, %1, %c0_i32_0 : i32
    scf.if %2 {
      %cst_24 = arith.constant 0.000000e+00 : f32
      %42 = vector.broadcast %cst_24 : f32 to vector<16x128xf32>
      %c0_25 = arith.constant 0 : index
      %c0_26 = arith.constant 0 : index
      %43 = vector.load %arg16[%c0_25, %c0_26] : memref<16x128xf32, #tpu.memory_space<vmem>>, vector<16x128xf32>
      tpu.vector_store %arg16[%c0_25, %c0_26], %42 {strides = array<i32>} : memref<16x128xf32, #tpu.memory_space<vmem>>, vector<16x128xf32>,
      %cst_27 = arith.constant 0.000000e+00 : f32
      %44 = vector.broadcast %cst_27 : f32 to vector<16x128xf32>
      %c0_28 = arith.constant 0 : index
      %c0_29 = arith.constant 0 : index
      %45 = vector.load %arg17[%c0_28, %c0_29] : memref<16x128xf32, #tpu.memory_space<vmem>>, vector<16x128xf32>
      tpu.vector_store %arg17[%c0_28, %c0_29], %44 {strides = array<i32>} : memref<16x128xf32, #tpu.memory_space<vmem>>, vector<16x128xf32>,
      %cst_30 = arith.constant 0.000000e+00 : f32
      %c0_31 = arith.constant 0 : index
      %46 = memref.load %arg18[%c0_31] : memref<8xf32, #tpu.memory_space<smem>>
      memref.store %cst_30, %arg18[%c0_31] : memref<8xf32, #tpu.memory_space<smem>>
      %cst_32 = arith.constant 0.000000e+00 : f32
      %c1 = arith.constant 1 : index
      %47 = memref.load %arg18[%c1] : memref<8xf32, #tpu.memory_space<smem>>
      memref.store %cst_32, %arg18[%c1] : memref<8xf32, #tpu.memory_space<smem>>
      %cst_33 = arith.constant 0.000000e+00 : f32
      %c2 = arith.constant 2 : index
      %48 = memref.load %arg18[%c2] : memref<8xf32, #tpu.memory_space<smem>>
      memref.store %cst_33, %arg18[%c2] : memref<8xf32, #tpu.memory_space<smem>>
      %cst_34 = arith.constant 0.000000e+00 : f32
      %c3 = arith.constant 3 : index
      %49 = memref.load %arg18[%c3] : memref<8xf32, #tpu.memory_space<smem>>
      memref.store %cst_34, %arg18[%c3] : memref<8xf32, #tpu.memory_space<smem>>
    } else {
    }
    %c0_i32_1 = arith.constant 0 : i32
    %3 = arith.cmpi eq, %arg0, %c0_i32_1 : i32
    %c0_i32_2 = arith.constant 0 : i32
    %4 = arith.cmpi eq, %arg1, %c0_i32_2 : i32
    %5 = arith.andi %3, %4 : i1
    %6 = arith.extui %5 : i1 to i32
    %c0_i32_3 = arith.constant 0 : i32
    %7 = arith.cmpi ne, %6, %c0_i32_3 : i32
    scf.if %7 {
      %c0_24 = arith.constant 0 : index
      %c0_25 = arith.constant 0 : index
      %42 = vector.load %arg6[%c0_24, %c0_25] : memref<2x32xf32, #tpu.memory_space<vmem>>, vector<2x32xf32>
      %c0_26 = arith.constant 0 : index
      %c0_27 = arith.constant 0 : index
      %43 = vector.load %arg7[%c0_26, %c0_27] : memref<2x32xf32, #tpu.memory_space<vmem>>, vector<2x32xf32>
      %44 = arith.mulf %42, %42 : vector<2x32xf32>
      %45 = math.exp %43 : vector<2x32xf32>
      %46 = arith.addf %44, %45 : vector<2x32xf32>
      %cst_28 = arith.constant 1.000000e+00 : f32
      %47 = vector.broadcast %cst_28 : f32 to vector<2x32xf32>
      %48 = arith.subf %46, %47 : vector<2x32xf32>
      %49 = arith.subf %48, %43 : vector<2x32xf32>
      %cst_29 = arith.constant 5.000000e-01 : f32
      %50 = vector.broadcast %cst_29 : f32 to vector<2x32xf32>
      %51 = arith.mulf %50, %49 : vector<2x32xf32>
      %52 = vector.shape_cast %51 : vector<2x32xf32> to vector<1x2x32xf32>
      %cst_30 = arith.constant dense<0.000000e+00> : vector<1xf32>
      %53 = vector.multi_reduction <add>, %52, %cst_30 [1, 2] : vector<1x2x32xf32> to vector<1xf32>
      %54 = vector.shape_cast %53 : vector<1xf32> to vector<1x1x1xf32>
      %55 = vector.extract %54[0, 0, 0] : f32 from vector<1x1x1xf32>
      %cst_31 = arith.constant 5.000000e-01 : f32
      %56 = vector.broadcast %cst_31 : f32 to vector<2x32xf32>
      %57 = arith.mulf %56, %43 : vector<2x32xf32>
      %58 = math.exp %57 : vector<2x32xf32>
      %c0_32 = arith.constant 0 : index
      %c0_33 = arith.constant 0 : index
      %59 = vector.load %arg8[%c0_32, %c0_33] : memref<2x32xf32, #tpu.memory_space<vmem>>, vector<2x32xf32>
      %60 = arith.mulf %58, %59 : vector<2x32xf32>
      %61 = arith.addf %42, %60 : vector<2x32xf32>
      %c0_34 = arith.constant 0 : index
      %c0_35 = arith.constant 0 : index
      %62 = vector.load %arg9[%c0_34, %c0_35] : memref<4x32xf32, #tpu.memory_space<vmem>>, vector<4x32xf32>
      %c0_36 = arith.constant 0 : index
      %c0_37 = arith.constant 0 : index
      %63 = vector.load %arg10[%c0_36, %c0_37] : memref<32x64xf32, #tpu.memory_space<vmem>>, vector<32x64xf32>
      %cst_38 = arith.constant dense<0.000000e+00> : vector<2x64xf32>
      %64 = tpu.matmul %61, %63, %cst_38 {dimension_numbers = #tpu.dot_dimension_numbers<[1], [0], [0], [1], [0, 0, 1, 1], [], []>} : vector<2x32xf32>, vector<32x64xf32>, vector<2x64xf32> -> vector<2x64xf32>
      %c0_39 = arith.constant 0 : index
      %c0_40 = arith.constant 0 : index
      %65 = vector.load %arg11[%c0_39, %c0_40] : memref<32x64xf32, #tpu.memory_space<vmem>>, vector<32x64xf32>
      %cst_41 = arith.constant dense<0.000000e+00> : vector<4x64xf32>
      %66 = tpu.matmul %62, %65, %cst_41 {dimension_numbers = #tpu.dot_dimension_numbers<[1], [0], [0], [1], [0, 0, 1, 1], [], []>} : vector<4x32xf32>, vector<32x64xf32>, vector<4x64xf32> -> vector<4x64xf32>
      %c0_42 = arith.constant 0 : index
      %c0_43 = arith.constant 0 : index
      %67 = vector.load %arg12[%c0_42, %c0_43] : memref<1x64xf32, #tpu.memory_space<vmem>>, vector<1x64xf32>
      %68 = vector.extract_strided_slice %66 {offsets = [0, 0], sizes = [2, 64], strides = [1, 1]} : vector<4x64xf32> to vector<2x64xf32>
      %69 = arith.addf %64, %68 : vector<2x64xf32>
      %70 = vector.broadcast %67 : vector<1x64xf32> to vector<2x64xf32>
      %71 = arith.addf %69, %70 : vector<2x64xf32>
      %72 = vector.extract_strided_slice %66 {offsets = [2, 0], sizes = [2, 64], strides = [1, 1]} : vector<4x64xf32> to vector<2x64xf32>
      %73 = arith.addf %64, %72 : vector<2x64xf32>
      %74 = vector.broadcast %67 : vector<1x64xf32> to vector<2x64xf32>
      %75 = arith.addf %73, %74 : vector<2x64xf32>
      %cst_44 = arith.constant 0.000000e+00 : f32
      %76 = vector.broadcast %cst_44 : f32 to vector<2x64xf32>
      %77 = arith.cmpf ogt, %71, %76 : vector<2x64xf32>
      %cst_45 = arith.constant 2.000000e-01 : f32
      %78 = vector.broadcast %cst_45 : f32 to vector<2x64xf32>
      %79 = arith.mulf %78, %71 : vector<2x64xf32>
      %80 = arith.select %77, %71, %79 : vector<2x64xi1>, vector<2x64xf32>
      %cst_46 = arith.constant 0.000000e+00 : f32
      %81 = vector.broadcast %cst_46 : f32 to vector<2x64xf32>
      %82 = arith.cmpf ogt, %75, %81 : vector<2x64xf32>
      %cst_47 = arith.constant 2.000000e-01 : f32
      %83 = vector.broadcast %cst_47 : f32 to vector<2x64xf32>
      %84 = arith.mulf %83, %75 : vector<2x64xf32>
      %85 = arith.select %82, %75, %84 : vector<2x64xi1>, vector<2x64xf32>
      %c0_48 = arith.constant 0 : index
      %c0_49 = arith.constant 0 : index
      %86 = vector.load %arg13[%c0_48, %c0_49] : memref<1x64xf32, #tpu.memory_space<vmem>>, vector<1x64xf32>
      %c0_50 = arith.constant 0 : index
      %c0_51 = arith.constant 0 : index
      %87 = vector.load %arg14[%c0_50, %c0_51] : memref<1x1xf32, #tpu.memory_space<vmem>>, vector<1x1xf32>
      %88 = vector.broadcast %86 : vector<1x64xf32> to vector<2x64xf32>
      %89 = arith.mulf %80, %88 : vector<2x64xf32>
      %cst_52 = arith.constant dense<0.000000e+00> : vector<2xf32>
      %90 = vector.multi_reduction <add>, %89, %cst_52 [1] : vector<2x64xf32> to vector<2xf32>
      %91 = vector.shape_cast %90 : vector<2xf32> to vector<2x1xf32>
      %92 = vector.broadcast %87 : vector<1x1xf32> to vector<2x1xf32>
      %93 = arith.addf %91, %92 : vector<2x1xf32>
      %94 = vector.broadcast %86 : vector<1x64xf32> to vector<2x64xf32>
      %95 = arith.mulf %85, %94 : vector<2x64xf32>
      %cst_53 = arith.constant dense<0.000000e+00> : vector<2xf32>
      %96 = vector.multi_reduction <add>, %95, %cst_53 [1] : vector<2x64xf32> to vector<2xf32>
      %97 = vector.shape_cast %96 : vector<2xf32> to vector<2x1xf32>
      %98 = vector.broadcast %87 : vector<1x1xf32> to vector<2x1xf32>
      %99 = arith.addf %97, %98 : vector<2x1xf32>
      %c0_54 = arith.constant 0 : index
      %100 = memref.load %arg18[%c0_54] : memref<8xf32, #tpu.memory_space<smem>>
      memref.store %55, %arg18[%c0_54] : memref<8xf32, #tpu.memory_space<smem>>
      %101 = vector.shape_cast %93 : vector<2x1xf32> to vector<1x2x1xf32>
      %cst_55 = arith.constant dense<0.000000e+00> : vector<1xf32>
      %102 = vector.multi_reduction <add>, %101, %cst_55 [1, 2] : vector<1x2x1xf32> to vector<1xf32>
      %103 = vector.shape_cast %102 : vector<1xf32> to vector<1x1x1xf32>
      %104 = vector.extract %103[0, 0, 0] : f32 from vector<1x1x1xf32>
      %cst_56 = arith.constant 5.000000e-01 : f32
      %105 = arith.mulf %104, %cst_56 : f32
      %c1 = arith.constant 1 : index
      %106 = memref.load %arg18[%c1] : memref<8xf32, #tpu.memory_space<smem>>
      memref.store %105, %arg18[%c1] : memref<8xf32, #tpu.memory_space<smem>>
      %cst_57 = arith.constant 0.000000e+00 : f32
      %107 = vector.broadcast %cst_57 : f32 to vector<2x1xf32>
      %108 = arith.subf %107, %93 : vector<2x1xf32>
      %cst_58 = arith.constant 0.000000e+00 : f32
      %109 = vector.broadcast %cst_58 : f32 to vector<2x1xf32>
      %110 = arith.maximumf %108, %109 : vector<2x1xf32>
      %111 = math.absf %108 : vector<2x1xf32>
      %cst_59 = arith.constant 0.000000e+00 : f32
      %112 = vector.broadcast %cst_59 : f32 to vector<2x1xf32>
      %113 = arith.subf %112, %111 : vector<2x1xf32>
      %114 = math.exp %113 : vector<2x1xf32>
      %cst_60 = arith.constant 1.000000e+00 : f32
      %115 = vector.broadcast %cst_60 : f32 to vector<2x1xf32>
      %116 = arith.addf %115, %114 : vector<2x1xf32>
      %117 = math.log %116 : vector<2x1xf32>
      %118 = arith.addf %110, %117 : vector<2x1xf32>
      %cst_61 = arith.constant 0.000000e+00 : f32
      %119 = vector.broadcast %cst_61 : f32 to vector<2x1xf32>
      %120 = arith.maximumf %99, %119 : vector<2x1xf32>
      %121 = math.absf %99 : vector<2x1xf32>
      %cst_62 = arith.constant 0.000000e+00 : f32
      %122 = vector.broadcast %cst_62 : f32 to vector<2x1xf32>
      %123 = arith.subf %122, %121 : vector<2x1xf32>
      %124 = math.exp %123 : vector<2x1xf32>
      %cst_63 = arith.constant 1.000000e+00 : f32
      %125 = vector.broadcast %cst_63 : f32 to vector<2x1xf32>
      %126 = arith.addf %125, %124 : vector<2x1xf32>
      %127 = math.log %126 : vector<2x1xf32>
      %128 = arith.addf %120, %127 : vector<2x1xf32>
      %129 = arith.addf %118, %128 : vector<2x1xf32>
      %130 = vector.shape_cast %129 : vector<2x1xf32> to vector<1x2x1xf32>
      %cst_64 = arith.constant dense<0.000000e+00> : vector<1xf32>
      %131 = vector.multi_reduction <add>, %130, %cst_64 [1, 2] : vector<1x2x1xf32> to vector<1xf32>
      %132 = vector.shape_cast %131 : vector<1xf32> to vector<1x1x1xf32>
      %133 = vector.extract %132[0, 0, 0] : f32 from vector<1x1x1xf32>
      %cst_65 = arith.constant 2.500000e-01 : f32
      %134 = arith.mulf %cst_65, %133 : f32
      %c2 = arith.constant 2 : index
      %135 = memref.load %arg18[%c2] : memref<8xf32, #tpu.memory_space<smem>>
      memref.store %134, %arg18[%c2] : memref<8xf32, #tpu.memory_space<smem>>
      %cst_66 = arith.constant 0.000000e+00 : f32
      %136 = vector.broadcast %cst_66 : f32 to vector<2x1xf32>
      %137 = arith.cmpf ogt, %93, %136 : vector<2x1xf32>
      %138 = arith.extui %137 : vector<2x1xi1> to vector<2x1xi32>
      %139 = arith.sitofp %138 : vector<2x1xi32> to vector<2x1xf32>
      %140 = vector.shape_cast %139 : vector<2x1xf32> to vector<1x2x1xf32>
      %cst_67 = arith.constant dense<0.000000e+00> : vector<1xf32>
      %141 = vector.multi_reduction <add>, %140, %cst_67 [1, 2] : vector<1x2x1xf32> to vector<1xf32>
      %142 = vector.shape_cast %141 : vector<1xf32> to vector<1x1x1xf32>
      %143 = vector.extract %142[0, 0, 0] : f32 from vector<1x1x1xf32>
      %cst_68 = arith.constant 0.000000e+00 : f32
      %144 = vector.broadcast %cst_68 : f32 to vector<2x1xf32>
      %145 = arith.cmpf olt, %99, %144 : vector<2x1xf32>
      %146 = arith.extui %145 : vector<2x1xi1> to vector<2x1xi32>
      %147 = arith.sitofp %146 : vector<2x1xi32> to vector<2x1xf32>
      %148 = vector.shape_cast %147 : vector<2x1xf32> to vector<1x2x1xf32>
      %cst_69 = arith.constant dense<0.000000e+00> : vector<1xf32>
      %149 = vector.multi_reduction <add>, %148, %cst_69 [1, 2] : vector<1x2x1xf32> to vector<1xf32>
      %150 = vector.shape_cast %149 : vector<1xf32> to vector<1x1x1xf32>
      %151 = vector.extract %150[0, 0, 0] : f32 from vector<1x1x1xf32>
      %152 = arith.addf %143, %151 : f32
      %cst_70 = arith.constant 2.500000e-01 : f32
      %153 = arith.mulf %cst_70, %152 : f32
      %c3 = arith.constant 3 : index
      %154 = memref.load %arg18[%c3] : memref<8xf32, #tpu.memory_space<smem>>
      memref.store %153, %arg18[%c3] : memref<8xf32, #tpu.memory_space<smem>>
    } else {
    }
    %c1_i32 = arith.constant 1 : i32
    %8 = arith.muli %arg0, %c1_i32 : i32
    %9 = arith.addi %8, %arg1 : i32
    %c16_i32 = arith.constant 16 : i32
    %10 = arith.muli %9, %c16_i32 : i32
    %11 = tpu.iota {dimensions = array<i32: 0>} : vector<16x128xi32>
    %12 = vector.broadcast %10 : i32 to vector<16x128xi32>
    %13 = arith.addi %11, %12 : vector<16x128xi32>
    %c16_i32_4 = arith.constant 16 : i32
    %14 = vector.broadcast %c16_i32_4 : i32 to vector<16x128xi32>
    %15 = arith.cmpi slt, %13, %14 : vector<16x128xi32>
    %c0 = arith.constant 0 : index
    %c0_5 = arith.constant 0 : index
    %16 = vector.load %arg2[%c0, %c0_5] : memref<16x128xf32, #tpu.memory_space<vmem>>, vector<16x128xf32>
    %c0_6 = arith.constant 0 : index
    %c0_7 = arith.constant 0 : index
    %17 = vector.load %arg3[%c0_6, %c0_7] : memref<16x128xf32, #tpu.memory_space<vmem>>, vector<16x128xf32>
    %18 = arith.subf %16, %17 : vector<16x128xf32>
    %c0_8 = arith.constant 0 : index
    %c0_9 = arith.constant 0 : index
    %19 = vector.load %arg4[%c0_8, %c0_9] : memref<16x128xf32, #tpu.memory_space<vmem>>, vector<16x128xf32>
    %20 = arith.subf %16, %19 : vector<16x128xf32>
    %c0_10 = arith.constant 0 : index
    %c0_11 = arith.constant 0 : index
    %21 = vector.load %arg5[%c0_10, %c0_11] : memref<16x128xf32, #tpu.memory_space<vmem>>, vector<16x128xf32>
    %22 = arith.subf %16, %21 : vector<16x128xf32>
    %c0_12 = arith.constant 0 : index
    %c0_13 = arith.constant 0 : index
    %23 = vector.load %arg16[%c0_12, %c0_13] : memref<16x128xf32, #tpu.memory_space<vmem>>, vector<16x128xf32>
    %24 = arith.mulf %18, %18 : vector<16x128xf32>
    %cst = arith.constant 0.000000e+00 : f32
    %25 = vector.broadcast %cst : f32 to vector<16x128xf32>
    %26 = arith.select %15, %24, %25 : vector<16x128xi1>, vector<16x128xf32>
    %27 = arith.addf %23, %26 : vector<16x128xf32>
    %c0_14 = arith.constant 0 : index
    %c0_15 = arith.constant 0 : index
    %28 = vector.load %arg16[%c0_14, %c0_15] : memref<16x128xf32, #tpu.memory_space<vmem>>, vector<16x128xf32>
    tpu.vector_store %arg16[%c0_14, %c0_15], %27 {strides = array<i32>} : memref<16x128xf32, #tpu.memory_space<vmem>>, vector<16x128xf32>,
    %c0_16 = arith.constant 0 : index
    %c0_17 = arith.constant 0 : index
    %29 = vector.load %arg17[%c0_16, %c0_17] : memref<16x128xf32, #tpu.memory_space<vmem>>, vector<16x128xf32>
    %30 = arith.mulf %20, %20 : vector<16x128xf32>
    %31 = arith.mulf %22, %22 : vector<16x128xf32>
    %32 = arith.addf %30, %31 : vector<16x128xf32>
    %cst_18 = arith.constant 5.000000e-01 : f32
    %33 = vector.broadcast %cst_18 : f32 to vector<16x128xf32>
    %34 = arith.mulf %33, %32 : vector<16x128xf32>
    %cst_19 = arith.constant 0.000000e+00 : f32
    %35 = vector.broadcast %cst_19 : f32 to vector<16x128xf32>
    %36 = arith.select %15, %34, %35 : vector<16x128xi1>, vector<16x128xf32>
    %37 = arith.addf %29, %36 : vector<16x128xf32>
    %c0_20 = arith.constant 0 : index
    %c0_21 = arith.constant 0 : index
    %38 = vector.load %arg17[%c0_20, %c0_21] : memref<16x128xf32, #tpu.memory_space<vmem>>, vector<16x128xf32>
    tpu.vector_store %arg17[%c0_20, %c0_21], %37 {strides = array<i32>} : memref<16x128xf32, #tpu.memory_space<vmem>>, vector<16x128xf32>,
    %c0_i32_22 = arith.constant 0 : i32
    %39 = arith.cmpi eq, %arg1, %c0_i32_22 : i32
    %40 = arith.extui %39 : i1 to i32
    %c0_i32_23 = arith.constant 0 : i32
    %41 = arith.cmpi ne, %40, %c0_i32_23 : i32
    scf.if %41 {
      %c0_24 = arith.constant 0 : index
      %c0_25 = arith.constant 0 : index
      %42 = vector.load %arg16[%c0_24, %c0_25] : memref<16x128xf32, #tpu.memory_space<vmem>>, vector<16x128xf32>
      %43 = vector.shape_cast %42 : vector<16x128xf32> to vector<1x16x128xf32>
      %cst_26 = arith.constant dense<0.000000e+00> : vector<1xf32>
      %44 = vector.multi_reduction <add>, %43, %cst_26 [1, 2] : vector<1x16x128xf32> to vector<1xf32>
      %45 = vector.shape_cast %44 : vector<1xf32> to vector<1x1x1xf32>
      %46 = vector.extract %45[0, 0, 0] : f32 from vector<1x1x1xf32>
      %c0_27 = arith.constant 0 : index
      %c0_28 = arith.constant 0 : index
      %47 = memref.load %arg15[%c0_27, %c0_28] : memref<1x8xf32, #tpu.memory_space<smem>>
      memref.store %46, %arg15[%c0_27, %c0_28] : memref<1x8xf32, #tpu.memory_space<smem>>
      %c0_29 = arith.constant 0 : index
      %c0_30 = arith.constant 0 : index
      %48 = vector.load %arg17[%c0_29, %c0_30] : memref<16x128xf32, #tpu.memory_space<vmem>>, vector<16x128xf32>
      %49 = vector.shape_cast %48 : vector<16x128xf32> to vector<1x16x128xf32>
      %cst_31 = arith.constant dense<0.000000e+00> : vector<1xf32>
      %50 = vector.multi_reduction <add>, %49, %cst_31 [1, 2] : vector<1x16x128xf32> to vector<1xf32>
      %51 = vector.shape_cast %50 : vector<1xf32> to vector<1x1x1xf32>
      %52 = vector.extract %51[0, 0, 0] : f32 from vector<1x1x1xf32>
      %c0_32 = arith.constant 0 : index
      %c1 = arith.constant 1 : index
      %53 = memref.load %arg15[%c0_32, %c1] : memref<1x8xf32, #tpu.memory_space<smem>>
      memref.store %52, %arg15[%c0_32, %c1] : memref<1x8xf32, #tpu.memory_space<smem>>
      %c0_33 = arith.constant 0 : index
      %54 = memref.load %arg18[%c0_33] : memref<8xf32, #tpu.memory_space<smem>>
      %c0_34 = arith.constant 0 : index
      %c2 = arith.constant 2 : index
      %55 = memref.load %arg15[%c0_34, %c2] : memref<1x8xf32, #tpu.memory_space<smem>>
      memref.store %54, %arg15[%c0_34, %c2] : memref<1x8xf32, #tpu.memory_space<smem>>
      %c1_35 = arith.constant 1 : index
      %56 = memref.load %arg18[%c1_35] : memref<8xf32, #tpu.memory_space<smem>>
      %c0_36 = arith.constant 0 : index
      %c3 = arith.constant 3 : index
      %57 = memref.load %arg15[%c0_36, %c3] : memref<1x8xf32, #tpu.memory_space<smem>>
      memref.store %56, %arg15[%c0_36, %c3] : memref<1x8xf32, #tpu.memory_space<smem>>
      %c2_37 = arith.constant 2 : index
      %58 = memref.load %arg18[%c2_37] : memref<8xf32, #tpu.memory_space<smem>>
      %c0_38 = arith.constant 0 : index
      %c4 = arith.constant 4 : index
      %59 = memref.load %arg15[%c0_38, %c4] : memref<1x8xf32, #tpu.memory_space<smem>>
      memref.store %58, %arg15[%c0_38, %c4] : memref<1x8xf32, #tpu.memory_space<smem>>
      %c3_39 = arith.constant 3 : index
      %60 = memref.load %arg18[%c3_39] : memref<8xf32, #tpu.memory_space<smem>>
      %c0_40 = arith.constant 0 : index
      %c5 = arith.constant 5 : index
      %61 = memref.load %arg15[%c0_40, %c5] : memref<1x8xf32, #tpu.memory_space<smem>>
      memref.store %60, %arg15[%c0_40, %c5] : memref<1x8xf32, #tpu.memory_space<smem>>
      %cst_41 = arith.constant 0.000000e+00 : f32
      %c0_42 = arith.constant 0 : index
      %c6 = arith.constant 6 : index
      %62 = memref.load %arg15[%c0_42, %c6] : memref<1x8xf32, #tpu.memory_space<smem>>
      memref.store %cst_41, %arg15[%c0_42, %c6] : memref<1x8xf32, #tpu.memory_space<smem>>
      %cst_43 = arith.constant 0.000000e+00 : f32
      %c0_44 = arith.constant 0 : index
      %c7 = arith.constant 7 : index
      %63 = memref.load %arg15[%c0_44, %c7] : memref<1x8xf32, #tpu.memory_space<smem>>
      memref.store %cst_43, %arg15[%c0_44, %c7] : memref<1x8xf32, #tpu.memory_space<smem>>
    } else {
    }
    return
  }
  func.func @transform_0(%arg0: i32, %arg1: i32) -> (i32, i32) {
    %c1_i32 = arith.constant 1 : i32
    %0 = arith.muli %arg0, %c1_i32 : i32
    %1 = arith.addi %0, %arg1 : i32
    %c0_i32 = arith.constant 0 : i32
    %c0_i32_0 = arith.constant 0 : i32
    return %1, %c0_i32 : i32, i32
  }
  func.func @transform_1(%arg0: i32, %arg1: i32) -> (i32, i32) {
    %c1_i32 = arith.constant 1 : i32
    %0 = arith.muli %arg0, %c1_i32 : i32
    %1 = arith.addi %0, %arg1 : i32
    %c0_i32 = arith.constant 0 : i32
    %c0_i32_0 = arith.constant 0 : i32
    return %1, %c0_i32 : i32, i32
  }
  func.func @transform_2(%arg0: i32, %arg1: i32) -> (i32, i32) {
    %c1_i32 = arith.constant 1 : i32
    %0 = arith.muli %arg0, %c1_i32 : i32
    %1 = arith.addi %0, %arg1 : i32
    %c0_i32 = arith.constant 0 : i32
    %c0_i32_0 = arith.constant 0 : i32
    return %1, %c0_i32 : i32, i32
  }
  func.func @transform_3(%arg0: i32, %arg1: i32) -> (i32, i32) {
    %c1_i32 = arith.constant 1 : i32
    %0 = arith.muli %arg0, %c1_i32 : i32
    %1 = arith.addi %0, %arg1 : i32
    %c0_i32 = arith.constant 0 : i32
    %c0_i32_0 = arith.constant 0 : i32
    return %1, %c0_i32 : i32, i32
  }
  func.func @transform_4(%arg0: i32, %arg1: i32) -> (i32, i32) {
    %c0_i32 = arith.constant 0 : i32
    %c0_i32_0 = arith.constant 0 : i32
    %c0_i32_1 = arith.constant 0 : i32
    return %c0_i32, %c0_i32_0 : i32, i32
  }
  func.func @transform_5(%arg0: i32, %arg1: i32) -> (i32, i32) {
    %c0_i32 = arith.constant 0 : i32
    %c0_i32_0 = arith.constant 0 : i32
    %c0_i32_1 = arith.constant 0 : i32
    return %c0_i32, %c0_i32_0 : i32, i32
  }
  func.func @transform_6(%arg0: i32, %arg1: i32) -> (i32, i32) {
    %c0_i32 = arith.constant 0 : i32
    %c0_i32_0 = arith.constant 0 : i32
    %c0_i32_1 = arith.constant 0 : i32
    return %c0_i32, %c0_i32_0 : i32, i32
  }
  func.func @transform_7(%arg0: i32, %arg1: i32) -> (i32, i32) {
    %c0_i32 = arith.constant 0 : i32
    %c0_i32_0 = arith.constant 0 : i32
    %c0_i32_1 = arith.constant 0 : i32
    return %c0_i32, %c0_i32_0 : i32, i32
  }
  func.func @transform_8(%arg0: i32, %arg1: i32) -> (i32, i32) {
    %c0_i32 = arith.constant 0 : i32
    %c0_i32_0 = arith.constant 0 : i32
    %c0_i32_1 = arith.constant 0 : i32
    return %c0_i32, %c0_i32_0 : i32, i32
  }
  func.func @transform_9(%arg0: i32, %arg1: i32) -> (i32, i32) {
    %c0_i32 = arith.constant 0 : i32
    %c0_i32_0 = arith.constant 0 : i32
    %c0_i32_1 = arith.constant 0 : i32
    return %c0_i32, %c0_i32_0 : i32, i32
  }
  func.func @transform_10(%arg0: i32, %arg1: i32) -> (i32, i32) {
    %c0_i32 = arith.constant 0 : i32
    %c0_i32_0 = arith.constant 0 : i32
    %c0_i32_1 = arith.constant 0 : i32
    return %c0_i32, %c0_i32_0 : i32, i32
  }
  func.func @transform_11(%arg0: i32, %arg1: i32) -> (i32, i32) {
    %c0_i32 = arith.constant 0 : i32
    %c0_i32_0 = arith.constant 0 : i32
    %c0_i32_1 = arith.constant 0 : i32
    return %c0_i32, %c0_i32_0 : i32, i32
  }
  func.func @transform_12(%arg0: i32, %arg1: i32) -> (i32, i32) {
    %c0_i32 = arith.constant 0 : i32
    %c0_i32_0 = arith.constant 0 : i32
    %c0_i32_1 = arith.constant 0 : i32
    return %c0_i32, %c0_i32_0 : i32, i32
  }
  func.func @transform_13(%arg0: i32, %arg1: i32) -> (i32, i32) {
    %c0_i32 = arith.constant 0 : i32
    %c0_i32_0 = arith.constant 0 : i32
    return %arg0, %c0_i32 : i32, i32
  }
}

</mosaic_0001>

<bundles_post_ra>
// kernel: elbo_forward.1
= control target key start
LH: loop header
LB: loop body
LE: loop exit
PB: predicated region body
PF: predicated region fallthrough
CT: control target
= control target key end

     0   :  { %s694_s0 = inlined_call_operand.vmem [shape: f32[16,128], index: 0, kind: input, shape index: {}]   ;;  %s695_s1 = inlined_call_operand.vmem [shape: f32[16,128], index: 1, kind: input, shape index: {}]   ;;  %s696_s2 = inlined_call_operand.vmem [shape: f32[16,128], index: 2, kind: input, shape index: {}]   ;;  %s697_s3 = inlined_call_operand.vmem [shape: f32[16,128], index: 3, kind: input, shape index: {}]   ;;  %s698_s4 = inlined_call_operand.vmem [shape: f32[2,32], index: 4, kind: input, shape index: {}]   ;;  %s699_s5 = inlined_call_operand.vmem [shape: f32[2,32], index: 5, kind: input, shape index: {}]   ;;  %s700_s6 = inlined_call_operand.vmem [shape: f32[2,32], index: 6, kind: input, shape index: {}]   ;;  %s701_s7 = inlined_call_operand.vmem [shape: f32[4,32], index: 7, kind: input, shape index: {}]   ;;  %s702_s8 = inlined_call_operand.vmem [shape: f32[32,64], index: 8, kind: input, shape index: {}]   ;;  %s703_s9 = inlined_call_operand.vmem [shape: f32[32,64], index: 9, kind: input, shape index: {}]   ;;  %s704_s10 = inlined_call_operand.vmem [shape: f32[1,64], index: 10, kind: input, shape index: {}]   ;;  %s705_s11 = inlined_call_operand.vmem [shape: f32[1,64], index: 11, kind: input, shape index: {}]   ;;  %s706_s12 = inlined_call_operand.<no memory space> [shape: f32[1,1], index: 12, kind: input, shape index: {}]   ;;  %s707_s13 = inlined_call_operand.vmem [shape: f32[1,8], index: 13, kind: output, shape index: {}]  }
   0x1   :  { %v18_v0 = vstv %s706_s12 }
   0x2   :  { %19 = vst [vmem:[#allocation5] sm:$0x1] %v18_v0 }
   0x3   :  { %v214_v1 = vld [vmem:[%s703_s9 + $0x18] sm:$0xff]  ;;  %v213_v3 = vld [vmem:[%s703_s9 + $0x10] sm:$0xff]  ;;  %v212_v5 = vld [vmem:[%s703_s9 + $0x8] sm:$0xff]  ;;  %vm187_vm0 = vcmask 261120  }
   0x4   :  { %v186_v2 = vld [vmem:[%s702_s8 + $0x18] sm:$0xff]  ;;  %230 = vmatpush.msra.mxu1 %v214_v1  ;;  %v185_v4 = vld [vmem:[%s702_s8 + $0x10] sm:$0xff]  ;;  %v184_v6 = vld [vmem:[%s702_s8 + $0x8] sm:$0xff] }
   0x5   :  { %203 = vmatpush.msra.mxu0 %v186_v2  ;;  %v211_v7 = vld [vmem:[%s703_s9] sm:$0xff] }
   0x6   :  { %231 = vmatpush.msra.mxu1 %v213_v3  ;;  %v157_v8 = vld [vmem:[%s699_s5] sm:$0x3] }
   0x7   :  { %204 = vmatpush.msra.mxu0 %v185_v4  ;;  %v183_v9 = vld [vmem:[%s702_s8] sm:$0xff]  ;;  %v176_v10 = vmul.f32 0.5, %v157_v8 }
   0x8   :  { %232 = vmatpush.msra.mxu1 %v212_v5  ;;  %v182_v11 = vld [vmem:[%s701_s7] sm:$0xf] }
   0x9   :  { %205 = vmatpush.msra.mxu0 %v184_v6 }
   0xa   :  { %20 = vsyncpa [#allocation7], 0  ;;  %v177_v12 = vmul.f32 1.442695, %v176_v10  ;;  %233 = vmatpush.msra.mxu1 %v211_v7  ;;  %v179_v13 = vld [vmem:[%s700_s6] sm:$0x3] }
   0xb   :  { %206 = vmatpush.msra.mxu0 %v183_v9  ;;  %491 = vmatmul.msk.f32.vlgmr.msra.gmra.mxu1 %vm187_vm0, %v182_v11  ;;  %v156_v15 = vld [vmem:[%s698_s4] sm:$0x3]  ;;  %v159_v18 = vmul.f32 1.442695, %v157_v8  ;;  %vm165_vm1 = vcmask 254976   ;;  %vm261_vm3 = vcmask 517120  }
   0xc   :  { %517 = vpow2.f32 %v177_v12  ;;  %v158_v19 = vmul.f32 %v156_v15, %v156_v15  ;;  %v514_v25 = vld [vmem:[%s704_s10] ss:$0 sm:$0xff]  ;;  %vm276_vm5 = vcmask 1024   ;;  %v364_v49 = vld [vmem:[%s694_s0 + $0x8] sm:$0xff]  ;;  %v543_v51 = vmov 0.0   ;;  %s455_s4 = sshll.u32 %s707_s13, 4  ;;  %s456_s4 = int_to_ptr.vmem [resolvable:$true] %s455_s4 }
   0xd   :  { %519 = vpow2.f32 %v159_v18  ;;  %v515_v33 = vld [vmem:[%s705_s11] ss:$0 sm:$0xff]  ;;  %v366_v53 = vld [vmem:[%s695_s1 + $0x8] sm:$0xff]  ;;  %s545_s11 = smov [#allocation6]  }
   0xe   :  { %v516_v43 = vld [vmem:[#allocation5] ss:$0 sm:$0xff]  ;;  %v368_v57 = vsub.f32 %v364_v49, %v366_v53  ;;  %v370_v11 = vld [vmem:[%s696_s2 + $0x8] sm:$0xff] }
   0xf   :  { %v363_v48 = vld [vmem:[%s694_s0] sm:$0xff] }
  0x10   :  { %v365_v50 = vld [vmem:[%s695_s1] sm:$0xff]  ;;  %v380_v60 = vmul.f32 %v368_v57, %v368_v57 }
  0x11   :  { %v367_v54 = vsub.f32 %v363_v48, %v365_v50  ;;  %v369_v10 = vld [vmem:[%s696_s2] sm:$0xff]  ;;  %s544_s2 = smov 0.0  }
  0x12   :  { %v518_v14 = vpop.eup %517  ;;  %v373_v12 = vld [vmem:[%s697_s3] sm:$0xff]  ;;  %447 = sst [smem:[#allocation6 + $0x6]] %s544_s2 }
  0x13   :  { %v180_v16 = vmul.f32 %v518_v14, %v179_v13  ;;  %v520_v21 = vpop.eup %519  ;;  %v379_v58 = vmul.f32 %v367_v54, %v367_v54  ;;  %v374_v13 = vld [vmem:[%s697_s3 + $0x8] sm:$0xff]  ;;  %449 = sst [smem:[#allocation6 + $0x7]] %s544_s2 }
  0x14   :  { %v161_v22 = vadd.f32 %v520_v21, %v158_v19  ;;  %v376_v18 = vsub.f32 %v364_v49, %v374_v13 }
  0x15   :  { %v181_v17 = vadd.f32 %v180_v16, %v156_v15  ;;  %v408_v0 = vadd.f32 %v380_v60, %v379_v58  ;;  %v371_v15 = vsub.f32 %v363_v48, %v369_v10  ;;  %v372_v16 = vsub.f32 %v364_v49, %v370_v11 }
  0x16   :  { %v489_v24 = vadd.f32 -1.0, %v161_v22 }
  0x17   :  { %490 = vmatmul.msk.f32.vlgmr.msra.gmra.mxu0 %vm187_vm0, %v181_v17  ;;  %v375_v17 = vsub.f32 %v363_v48, %v373_v12  ;;  %v389_v21 = vmul.f32 %v371_v15, %v371_v15  ;;  %v390_v22 = vmul.f32 %v372_v16, %v372_v16 }
  0x18   :  { %v163_v27 = vsub.f32 %v489_v24, %v157_v8  ;;  %v392_v24 = vmul.f32 %v376_v18, %v376_v18 }
  0x1a   :  { %v164_v30 = vmul.f32 0.5, %v163_v27 }
  0x1c   :  { %v166_v34 = vsel %vm165_vm1, %v164_v30, 0.0 }
  0x1d   :  { %167 = vadd.xlane.f32.xlu1 %v166_v34 }
  0x88   :  { %v235_v20 = vpop.f32.mrf.mxu1 }
  0x89   :  { %v245_v23 = vrot.slane %v235_v20, 2 }
  0x94   :  { %v208_v26 = vpop.f32.mrf.mxu0 }
  0x95   :  { %v239_v28 = vadd.f32 %v235_v20, %v208_v26  ;;  %v247_v29 = vadd.f32 %v245_v23, %v208_v26  ;;  %v391_v23 = vmul.f32 %v375_v17, %v375_v17 }
  0x97   :  { %v243_v31 = vadd.f32 %v514_v25, %v239_v28  ;;  %v248_v32 = vadd.f32 %v514_v25, %v247_v29  ;;  %v393_v30 = vadd.f32 %v391_v23, %v389_v21 }
  0x99   :  { %v250_v35 = vmul.f32 0.2, %v243_v31  ;;  %vm249_vm2 = vcmp.gt.f32.partialorder %v243_v31, 0.0  ;;  %v253_v36 = vmul.f32 0.2, %v248_v32  ;;  %vm252_vm4 = vcmp.gt.f32.partialorder %v248_v32, 0.0 }
  0x9a   :  { %v395_v34 = vmul.f32 0.5, %v393_v30 }
  0x9b   :  { %v251_v37 = vsel %vm249_vm2, %v243_v31, %v250_v35  ;;  %v254_v40 = vsel %vm252_vm4, %v248_v32, %v253_v36  ;;  %v394_v31 = vadd.f32 %v392_v24, %v390_v22 }
  0x9c   :  { %v260_v38 = vmul.f32 %v515_v33, %v251_v37  ;;  %v269_v41 = vmul.f32 %v515_v33, %v254_v40  ;;  %v168_v37 = vpop.xlane.xlu1 %167 }
  0x9d   :  { %v396_v35 = vmul.f32 0.5, %v394_v31 }
  0x9e   :  { %v262_v39 = vsel %vm261_vm3, %v260_v38, 0.0  ;;  %v270_v42 = vsel %vm261_vm3, %v269_v41, 0.0  ;;  %v169_v38 = vrot.slane %v168_v37, 4 }
  0x9f   :  { %263 = vadd.xlane.f32.xlu0 %v262_v39  ;;  %v422_v36 = vadd.f32 %v396_v35, %v395_v34 }
  0xa0   :  { %v170_v39 = vadd.f32 %v169_v38, %v168_v37 }
  0xa2   :  { %v171_v40 = vrot.slane %v170_v39, 2 }
  0xa4   :  { %v172_v41 = vadd.f32 %v171_v40, %v170_v39 }
  0xa7   :  { %271 = vadd.xlane.f32.xlu0 %v270_v42  ;;  %v173_v42 = vrot.slane %v172_v41, 1 }
 0x112   :  { %v264_v44 = vpop.xlane.xlu0 %263 }
 0x113   :  { %v268_v45 = vadd.f32 %v516_v43, %v264_v44 }
 0x115   :  { %v290_v46 = vsub.f32 0.0, %v268_v45  ;;  %v277_v47 = vsel %vm276_vm5, %v268_v45, 0.0  ;;  %vm323_vm6 = vcmp.gt.f32.partialorder %v268_v45, 0.0 }
 0x116   :  { %278 = vadd.xlane.f32.xlu1 %v277_v47  ;;  %v492_v52 = vsel %vm323_vm6, 1.0, %v543_v51 }
 0x117   :  { %v292_v55 = vand.u32 2147483647, %v290_v46  ;;  %v326_v56 = vsel %vm276_vm5, %v492_v52, 0.0  ;;  %v291_v26 = vmax.f32 %v290_v46, 0.0 }
 0x118   :  { %327 = vadd.xlane.f32.xlu2 %v326_v56 }
 0x119   :  { %v293_v59 = vsub.f32 0.0, %v292_v55 }
 0x11a   :  { %v272_v61 = vpop.xlane.xlu0 %271 }
 0x11b   :  { %v294_v62 = vmul.f32 1.442695, %v293_v59  ;;  %v273_v63 = vadd.f32 %v516_v43, %v272_v61  ;;  %v174_v43 = vadd.f32 %v173_v42, %v172_v41 }
 0x11d   :  { %521 = vpow2.f32 %v294_v62  ;;  %v301_v1 = vand.u32 2147483647, %v273_v63  ;;  %vm336_vm7 = vcmp.lt.f32.partialorder %v273_v63, 0.0  ;;  %v300_v25 = vmax.f32 %v273_v63, 0.0  ;;  %497 = vpush %v174_v43 }
 0x11e   :  { %v493_v2 = vsel %vm336_vm7, 1.0, %v543_v51  ;;  %409 = vadd.xlane.f32.xlu1 %v408_v0 }
 0x11f   :  { %v302_v3 = vsub.f32 0.0, %v301_v1  ;;  %v339_v4 = vsel %vm276_vm5, %v493_v2, 0.0 }
 0x120   :  { %340 = vadd.xlane.f32.xlu0 %v339_v4 }
 0x121   :  { %v303_v5 = vmul.f32 1.442695, %v302_v3 }
 0x123   :  { %v522_v6 = vpop.eup %521  ;;  %523 = vpow2.f32 %v303_v5 }
 0x124   :  { %v296_v7 = vadd.f32 1.0, %v522_v6 }
 0x126   :  { %525 = vlog2.f32 %v296_v7 }
 0x129   :  { %v524_v8 = vpop.eup %523 }
 0x12a   :  { %v305_v9 = vadd.f32 1.0, %v524_v8 }
 0x12c   :  { %527 = vlog2.f32 %v305_v9  ;;  %v526_v14 = vpop.eup %525 }
 0x12d   :  { %v298_v19 = vmul.f32 0.6931472, %v526_v14 }
 0x12f   :  { %v299_v28 = vadd.f32 %v298_v19, %v291_v26 }
 0x132   :  { %v528_v20 = vpop.eup %527 }
 0x133   :  { %v307_v27 = vmul.f32 0.6931472, %v528_v20 }
 0x135   :  { %v308_v29 = vadd.f32 %v307_v27, %v300_v25 }
 0x137   :  { %v309_v32 = vadd.f32 %v308_v29, %v299_v28 }
 0x139   :  { %v310_v33 = vsel %vm276_vm5, %v309_v32, 0.0 }
 0x13a   :  { %311 = vadd.xlane.f32.xlu2 %v310_v33 }
 0x142   :  { %423 = vadd.xlane.f32.xlu2 %v422_v36 }
 0x14e   :  { %s498_s3 = spop %497 }
 0x14f   :  { %436 = sst [smem:[#allocation6 + $0x2]] %s498_s3 }
 0x189   :  { %v279_v44 = vpop.xlane.xlu1 %278 }
 0x18a   :  { %v280_v45 = vrot.slane %v279_v44, 4 }
 0x18b   :  { %v328_v51 = vpop.xlane.xlu2 %327 }
 0x18c   :  { %v281_v46 = vadd.f32 %v280_v45, %v279_v44  ;;  %v329_v54 = vrot.slane %v328_v51, 4 }
 0x18e   :  { %v282_v47 = vrot.slane %v281_v46, 2  ;;  %v330_v57 = vadd.f32 %v329_v54, %v328_v51 }
 0x190   :  { %v283_v48 = vadd.f32 %v282_v47, %v281_v46  ;;  %v331_v60 = vrot.slane %v330_v57, 2 }
 0x191   :  { %v410_v52 = vpop.xlane.xlu1 %409 }
 0x192   :  { %v284_v49 = vrot.slane %v283_v48, 1  ;;  %v411_v55 = vrot.slane %v410_v52, 4  ;;  %v332_v3 = vadd.f32 %v331_v60, %v330_v57 }
 0x193   :  { %v341_v53 = vpop.xlane.xlu0 %340 }
 0x194   :  { %v285_v50 = vadd.f32 %v284_v49, %v283_v48  ;;  %v342_v56 = vrot.slane %v341_v53, 4  ;;  %v412_v58 = vadd.f32 %v411_v55, %v410_v52  ;;  %v333_v8 = vrot.slane %v332_v3, 1 }
 0x196   :  { %499 = vpush %v285_v50  ;;  %v343_v59 = vadd.f32 %v342_v56, %v341_v53  ;;  %v413_v62 = vrot.slane %v412_v58, 2  ;;  %v334_v15 = vadd.f32 %v333_v8, %v332_v3 }
 0x198   :  { %v344_v63 = vrot.slane %v343_v59, 2  ;;  %v414_v2 = vadd.f32 %v413_v62, %v412_v58 }
 0x19a   :  { %v345_v4 = vadd.f32 %v344_v63, %v343_v59  ;;  %v415_v9 = vrot.slane %v414_v2, 1 }
 0x19c   :  { %v346_v12 = vrot.slane %v345_v4, 1  ;;  %v416_v16 = vadd.f32 %v415_v9, %v414_v2 }
 0x19e   :  { %v347_v18 = vadd.f32 %v346_v12, %v345_v4 }
 0x1ad   :  { %v312_v61 = vpop.xlane.xlu2 %311 }
 0x1ae   :  { %v313_v0 = vrot.slane %v312_v61, 4 }
 0x1b0   :  { %v314_v1 = vadd.f32 %v313_v0, %v312_v61 }
 0x1b2   :  { %v315_v5 = vrot.slane %v314_v1, 2 }
 0x1b4   :  { %v316_v6 = vadd.f32 %v315_v5, %v314_v1 }
 0x1b5   :  { %v424_v7 = vpop.xlane.xlu2 %423 }
 0x1b6   :  { %v425_v10 = vrot.slane %v424_v7, 4  ;;  %v317_v11 = vrot.slane %v316_v6, 1 }
 0x1b8   :  { %v426_v13 = vadd.f32 %v425_v10, %v424_v7  ;;  %v318_v14 = vadd.f32 %v317_v11, %v316_v6 }
 0x1ba   :  { %v427_v17 = vrot.slane %v426_v13, 2  ;;  %501 = vpush %v318_v14 }
 0x1bb   :  { %503 = vpush %v334_v15 }
 0x1bc   :  { %v428_v19 = vadd.f32 %v427_v17, %v426_v13  ;;  %505 = vpush %v347_v18 }
 0x1bd   :  { %507 = vpush %v416_v16 }
 0x1be   :  { %v429_v20 = vrot.slane %v428_v19, 1 }
 0x1c0   :  { %v430_v21 = vadd.f32 %v429_v20, %v428_v19 }
 0x1c2   :  { %509 = vpush %v430_v21 }
 0x1c7   :  { %s500_s25 = spop %499 }
 0x1c8   :  { %s287_s26 = smul.f32 0.5, %s500_s25 }
 0x1ca   :  { %439 = sst [smem:[#allocation6 + $0x3]] %s287_s26 }
 0x1eb   :  { %s502_s27 = spop %501 }
 0x1ec   :  { %s320_s28 = smul.f32 0.25, %s502_s27  ;;  %s504_s9 = spop %503 }
 0x1ed   :  { %s506_s5 = spop %505 }
 0x1ee   :  { %442 = sst [smem:[#allocation6 + $0x4]] %s320_s28  ;;  %s508_s8 = spop %507 }
 0x1ef   :  { %s349_s29 = sadd.f32 %s506_s5, %s504_s9 }
 0x1f0   :  { %419 = sst [smem:[#allocation6]] %s508_s8 }
 0x1f1   :  { %s350_s6 = smul.f32 0.25, %s349_s29 }
 0x1f3   :  { %445 = sst [smem:[#allocation6 + $0x5]] %s350_s6  ;;  %s510_s10 = spop %509 }
 0x1f4   :  { %433 = sst [smem:[#allocation6 + $0x1]] %s510_s10 }
 0x1f5   :  { %458 = dma.smem_to_vmem %s545_s11, 16, %s456_s4, [#allocation7]  }
 0x1f6   :  { %541 = dma.done.wait [#allocation7], 16  }
 0x1f7   :  { %542 = vsyncadd [#allocation7], 4294967280 }
 0x1f8   :  { %463 = sfence }
 0x1f9   :  { %464 = vsyncpa [#allocation7], 1 }

</bundles_post_ra>
